<compile_context>
chip_gen: v6e
topology: v6e:2x2x1
jax: 0.10.0
libtpu: 0.0.40
codegen_flags: <defaults>
</compile_context>

<pallas_src>
import functools

import jax
import jax.numpy as jnp
from jax import lax
from jax.experimental import pallas as pl
from jax.experimental.pallas import tpu as pltpu


# ----------------------------------------------------------------------------
# Pallas kernels
# ----------------------------------------------------------------------------
def _conv_bn_relu_kernel(x_ref, w_ref, b_ref, o_ref, xs_ref, *, K, pad):
    """Stem: zero-pad -> Conv1d(K, stride 1) -> folded BN bias -> ReLU, one batch row.

    x_ref : (1, L_in, C_in)
    w_ref : (K*C_in, C_out)   weights with post-BN scale folded in
    b_ref : (1, C_out)        folded BN bias
    o_ref : (1, L_out, C_out)
    xs_ref: (L_in + 2*pad, C_in) VMEM scratch for the zero-padded input
    """
    L_in = x_ref.shape[1]
    L_out = o_ref.shape[1]
    f32 = jnp.float32

    xs_ref[...] = jnp.zeros_like(xs_ref)                       # true zero padding
    xs_ref[pl.ds(pad, L_in), :] = x_ref[0].astype(f32)

    # im2col: K shifted slices concatenated along lanes -> one deep matmul.
    cols = jnp.concatenate([xs_ref[pl.ds(k, L_out), :] for k in range(K)], axis=-1)
    acc = jnp.dot(cols, w_ref[...], preferred_element_type=f32) + b_ref[...].astype(f32)
    o_ref[0] = jnp.maximum(acc, 0.0).astype(o_ref.dtype)


def _block_kernel(x_ref, s1_ref, b1_ref, w1_ref, s2_ref, b2_ref, w2_ref, *rest,
                  K, stride, has_down):
    """Fused BasicBlock for one batch row:
        identity = downsample(x)            (post-BN folded into wd/bd)  [optional]
        h   = conv1(relu(bn1(x)))           (stride, pad 1, K=3)
        out = conv2(relu(bn2(h))) + identity (stride 1, pad 1, K=3)
    Intermediates stay in VMEM scratch; padding is applied after the activation.
    """
    if has_down:
        wd_ref, bd_ref, o_ref, xs_ref, hs_ref = rest
    else:
        o_ref, xs_ref, hs_ref = rest

    L_in = x_ref.shape[1]
    L_mid = o_ref.shape[1]
    f32 = jnp.float32

    x = x_ref[0].astype(f32)                                   # (L_in, C_in)

    # Row-selection matrix for strided convs (avoids strided ref loads).
    L_sel = stride * (L_mid - 1) + 1
    if stride > 1:
        sel = (lax.broadcasted_iota(jnp.int32, (L_mid, L_sel), 1)
               == stride * lax.broadcasted_iota(jnp.int32, (L_mid, L_sel), 0)
               ).astype(f32)
    else:
        sel = None

    # ---- identity / downsample path (operates on raw x, per PyTorch) ----
    if has_down:
        if stride > 1:
            xid = jnp.dot(sel, x[:L_sel, :], preferred_element_type=f32)
        else:
            xid = x
        identity = jnp.dot(xid, wd_ref[...], preferred_element_type=f32) + bd_ref[...]
    else:
        identity = x                                            # C_in == C_out, stride 1

    # ---- conv1: BN1 -> ReLU -> zero-pad(1) -> im2col -> matmul (stride via sel) ----
    a1 = jnp.maximum(x * s1_ref[...].astype(f32) + b1_ref[...].astype(f32), 0.0)
    xs_ref[...] = jnp.zeros_like(xs_ref)
    xs_ref[pl.ds(1, L_in), :] = a1
    cols1 = jnp.concatenate([xs_ref[pl.ds(k, L_sel), :] for k in range(K)], axis=-1)
    if stride > 1:
        cols1 = jnp.dot(sel, cols1, preferred_element_type=f32)
    h = jnp.dot(cols1, w1_ref[...], preferred_element_type=f32)  # (L_mid, C_out)

    # ---- conv2: BN2 -> (dropout = id) -> ReLU -> zero-pad(1) -> im2col -> matmul ----
    a2 = jnp.maximum(h * s2_ref[...].astype(f32) + b2_ref[...].astype(f32), 0.0)
    hs_ref[...] = jnp.zeros_like(hs_ref)
    hs_ref[pl.ds(1, L_mid), :] = a2
    cols2 = jnp.concatenate([hs_ref[pl.ds(k, L_mid), :] for k in range(K)], axis=-1)
    out = jnp.dot(cols2, w2_ref[...], preferred_element_type=f32) + identity

    o_ref[0] = out.astype(o_ref.dtype)


def _bn_relu_pool_kernel(x_ref, s_ref, b_ref, o_ref):
    """Final BN -> ReLU -> global average pool over L, for one batch row."""
    L = x_ref.shape[1]
    x = x_ref[0].astype(jnp.float32)                            # (L, C)
    y = jnp.maximum(x * s_ref[...] + b_ref[...], 0.0)
    o_ref[...] = (jnp.sum(y, axis=0, keepdims=True) * (1.0 / L)).astype(o_ref.dtype)


# ----------------------------------------------------------------------------
# Wrappers (glue: weight folding / flattening, pallas_call plumbing)
# ----------------------------------------------------------------------------
def conv_bn_relu(x, w, scale, bias, *, padding):
    """x: (B, L, C_in), w: (K, C_in, C_out) -> relu(bn(conv(x)))  of shape (B, L_out, C_out)."""
    B, L, C_in = x.shape
    K, _, C_out = w.shape
    L_out = L + 2 * padding - K + 1
    # Fold the post-conv BN into the weights + a bias vector (no nonlinearity between).
    w_flat = (w * scale[None, None, :]).reshape(K * C_in, C_out).astype(jnp.float32)
    bias_row = bias.reshape(1, C_out).astype(jnp.float32)

    kernel = functools.partial(_conv_bn_relu_kernel, K=K, pad=padding)
    return pl.pallas_call(
        kernel,
        out_shape=jax.ShapeDtypeStruct((B, L_out, C_out), x.dtype),
        grid=(B,),
        in_specs=[
            pl.BlockSpec((1, L, C_in), lambda i: (i, 0, 0)),
            pl.BlockSpec((K * C_in, C_out), lambda i: (0, 0)),
            pl.BlockSpec((1, C_out), lambda i: (0, 0)),
        ],
        out_specs=pl.BlockSpec((1, L_out, C_out), lambda i: (i, 0, 0)),
        scratch_shapes=[pltpu.VMEM((L + 2 * padding, C_in), jnp.float32)],
        compiler_params=pltpu.CompilerParams(dimension_semantics=("parallel",)),
    )(x, w_flat, bias_row)


def residual_block(x, blk):
    """x: (B, L_in, C_in) -> (B, L_out, C_out); whole BasicBlock in one pallas_call."""
    B, L_in, C_in = x.shape
    w1 = blk["w1"]
    K, _, C_out = w1.shape                       # K == 3
    stride = blk["stride"]
    L_out = (L_in + 2 - K) // stride + 1

    s1, b1 = blk["bn1"]
    s2, b2 = blk["bn2"]
    args = [
        x,
        s1.reshape(1, C_in).astype(jnp.float32),
        b1.reshape(1, C_in).astype(jnp.float32),
        w1.reshape(K * C_in, C_out).astype(jnp.float32),
        s2.reshape(1, C_out).astype(jnp.float32),
        b2.reshape(1, C_out).astype(jnp.float32),
        blk["w2"].reshape(K * C_out, C_out).astype(jnp.float32),
    ]
    in_specs = [
        pl.BlockSpec((1, L_in, C_in), lambda i: (i, 0, 0)),
        pl.BlockSpec((1, C_in), lambda i: (0, 0)),
        pl.BlockSpec((1, C_in), lambda i: (0, 0)),
        pl.BlockSpec((K * C_in, C_out), lambda i: (0, 0)),
        pl.BlockSpec((1, C_out), lambda i: (0, 0)),
        pl.BlockSpec((1, C_out), lambda i: (0, 0)),
        pl.BlockSpec((K * C_out, C_out), lambda i: (0, 0)),
    ]

    has_down = "down_w" in blk
    if has_down:
        ds, db = blk["down_bn"]
        # Fold the downsample BN into the 1x1 conv weight + bias.
        wd_flat = (blk["down_w"][0] * ds[None, :]).astype(jnp.float32)   # (C_in, C_out)
        args += [wd_flat, db.reshape(1, C_out).astype(jnp.float32)]
        in_specs += [
            pl.BlockSpec((C_in, C_out), lambda i: (0, 0)),
            pl.BlockSpec((1, C_out), lambda i: (0, 0)),
        ]

    kernel = functools.partial(_block_kernel, K=K, stride=stride, has_down=has_down)
    return pl.pallas_call(
        kernel,
        out_shape=jax.ShapeDtypeStruct((B, L_out, C_out), x.dtype),
        grid=(B,),
        in_specs=in_specs,
        out_specs=pl.BlockSpec((1, L_out, C_out), lambda i: (i, 0, 0)),
        scratch_shapes=[pltpu.VMEM((L_in + 2, C_in), jnp.float32),
                        pltpu.VMEM((L_out + 2, C_out), jnp.float32)],
        compiler_params=pltpu.CompilerParams(dimension_semantics=("parallel",)),
    )(*args)


def bn_relu_global_pool(x, scale, bias):
    """x: (B, L, C) -> (B, C)."""
    B, L, C = x.shape
    return pl.pallas_call(
        _bn_relu_pool_kernel,
        out_shape=jax.ShapeDtypeStruct((B, C), x.dtype),
        grid=(B,),
        in_specs=[
            pl.BlockSpec((1, L, C), lambda i: (i, 0, 0)),
            pl.BlockSpec((1, C), lambda i: (0, 0)),
            pl.BlockSpec((1, C), lambda i: (0, 0)),
        ],
        out_specs=pl.BlockSpec((1, C), lambda i: (i, 0)),
        compiler_params=pltpu.CompilerParams(dimension_semantics=("parallel",)),
    )(x, scale.reshape(1, C).astype(jnp.float32), bias.reshape(1, C).astype(jnp.float32))


# ----------------------------------------------------------------------------
# Deterministic parameter init (shapes follow ResNet1D.__init__)
# ----------------------------------------------------------------------------
def _bn_params(key, c, eps=1e-5):
    k1, k2, k3, k4 = jax.random.split(key, 4)
    gamma = 1.0 + 0.1 * jax.random.normal(k1, (c,), jnp.float32)
    beta = 0.1 * jax.random.normal(k2, (c,), jnp.float32)
    mean = 0.1 * jax.random.normal(k3, (c,), jnp.float32)
    var = 1.0 + 0.5 * jax.random.uniform(k4, (c,), jnp.float32)
    scale = gamma / jnp.sqrt(var + eps)
    bias = beta - mean * scale
    return scale, bias


def _conv_w(key, c_in, c_out, k):
    # (K, C_in, C_out); equivalent to torch Conv1d weight (C_out, C_in, K) transposed.
    fan_in = c_in * k
    return jax.random.normal(key, (k, c_in, c_out), jnp.float32) / jnp.sqrt(fan_in)


def init_resnet1d_params(key, num_blocks=(2, 2, 2), channels=(64, 128, 256)):
    keys = iter(jax.random.split(key, 4 + 8 * sum(num_blocks)))
    params = {
        "stem_w": _conv_w(next(keys), 3, channels[0], 7),
        "stem_bn": _bn_params(next(keys), channels[0]),
        "layers": [],
    }
    in_c = channels[0]
    for li, (nb, out_c) in enumerate(zip(num_blocks, channels)):
        layer_stride = 1 if li == 0 else 2
        blocks = []
        for bi in range(nb):
            s = layer_stride if bi == 0 else 1
            b_in = in_c if bi == 0 else out_c
            blk = {
                "bn1": _bn_params(next(keys), b_in),
                "w1": _conv_w(next(keys), b_in, out_c, 3),
                "bn2": _bn_params(next(keys), out_c),
                "w2": _conv_w(next(keys), out_c, out_c, 3),
                "stride": s,
            }
            if s != 1 or b_in != out_c:
                blk["down_w"] = _conv_w(next(keys), b_in, out_c, 1)
                blk["down_bn"] = _bn_params(next(keys), out_c)
            blocks.append(blk)
        params["layers"].append(blocks)
        in_c = out_c
    params["final_bn"] = _bn_params(next(keys), channels[-1])
    return params


# ----------------------------------------------------------------------------
# Model forward (Pallas) and pure-JAX reference
# ----------------------------------------------------------------------------
def resnet1d_forward(params, x_ncl):
    x = jnp.transpose(x_ncl, (0, 2, 1))                         # (B, C, L) -> (B, L, C)
    x = conv_bn_relu(x, params["stem_w"], *params["stem_bn"], padding=3)   # stem
    for blocks in params["layers"]:
        for blk in blocks:
            x = residual_block(x, blk)
    return bn_relu_global_pool(x, *params["final_bn"])          # (B, C_last)


def _ref_conv(x, w, stride, padding):
    return lax.conv_general_dilated(x, w, (stride,), [(padding, padding)],
                                    dimension_numbers=("NWC", "WIO", "NWC"))


def resnet1d_reference(params, x_ncl):
    x = jnp.transpose(x_ncl, (0, 2, 1))
    s0, b0 = params["stem_bn"]
    x = jnp.maximum(_ref_conv(x, params["stem_w"], 1, 3) * s0 + b0, 0.0)
    for blocks in params["layers"]:
        for blk in blocks:
            st = blk["stride"]
            if "down_w" in blk:
                ds, db = blk["down_bn"]
                identity = _ref_conv(x, blk["down_w"], st, 0) * ds + db
            else:
                identity = x
            s1, b1 = blk["bn1"]
            h = _ref_conv(jnp.maximum(x * s1 + b1, 0.0), blk["w1"], st, 1)
            s2, b2 = blk["bn2"]
            x = _ref_conv(jnp.maximum(h * s2 + b2, 0.0), blk["w2"], 1, 1) + identity
    sf, bf = params["final_bn"]
    return jnp.mean(jnp.maximum(x * sf + bf, 0.0), axis=1)


# ----------------------------------------------------------------------------
if __name__ == "__main__":
    key = jax.random.PRNGKey(0)
    pkey, xkey = jax.random.split(key)

    # Scaled-down instantiation of ResNet1D(num_blocks=[2,2,2], channels=[64,128,256]).
    num_blocks = (2, 2, 2)
    channels = (8, 16, 32)
    params = init_resnet1d_params(pkey, num_blocks, channels)

    B, L = 2, 16
    x = jax.random.normal(xkey, (B, 3, L), jnp.float32)         # PyTorch NCL input

    with jax.default_matmul_precision("highest"):
        out = jax.block_until_ready(resnet1d_forward(params, x))
        ref = jax.block_until_ready(resnet1d_reference(params, x))

    assert out.shape == (B, channels[-1]), out.shape
    assert bool(jnp.all(jnp.isfinite(out)))
    assert bool(jnp.allclose(out, ref, rtol=1e-3, atol=1e-3)), (out, ref)
    print("KERNEL_OK")
</pallas_src>

<mosaic_0001>
module attributes {stable_mosaic.version = 11 : i64} {
  func.func @_conv_bn_relu_kernel(%arg0: i32, %arg1: memref<1x16x3xf32, #tpu.memory_space<vmem>>, %arg2: memref<21x8xf32, #tpu.memory_space<vmem>>, %arg3: memref<1x8xf32, #tpu.memory_space<vmem>>, %arg4: memref<1x16x8xf32, #tpu.memory_space<vmem>>, %arg5: memref<22x3xf32, #tpu.memory_space<vmem>>) attributes {dimension_semantics = [#tpu.dimension_semantics<parallel>], iteration_bounds = array<i64: 2>, scalar_prefetch = 0 : i64, scratch_operands = 1 : i64, tpu.core_type = #tpu.core_type<tc>, window_params = [{transform_indices = @transform_0, window_bounds = array<i64: 1, 16, 3>}, {pipeline_mode = #tpu.pipeline_mode<synchronous>, transform_indices = @transform_1, window_bounds = array<i64: 21, 8>}, {pipeline_mode = #tpu.pipeline_mode<synchronous>, transform_indices = @transform_2, window_bounds = array<i64: 1, 8>}, {transform_indices = @transform_3, window_bounds = array<i64: 1, 16, 8>}]} {
    %cst = arith.constant 0.000000e+00 : f32
    %0 = vector.broadcast %cst : f32 to vector<22x3xf32>
    %c0 = arith.constant 0 : index
    %c0_0 = arith.constant 0 : index
    %1 = vector.load %arg5[%c0, %c0_0] : memref<22x3xf32, #tpu.memory_space<vmem>>, vector<22x3xf32>
    tpu.vector_store %arg5[%c0, %c0_0], %0 {strides = array<i32>} : memref<22x3xf32, #tpu.memory_space<vmem>>, vector<22x3xf32>,
    %c0_1 = arith.constant 0 : index
    %c0_2 = arith.constant 0 : index
    %c0_3 = arith.constant 0 : index
    %2 = vector.load %arg1[%c0_1, %c0_2, %c0_3] : memref<1x16x3xf32, #tpu.memory_space<vmem>>, vector<1x16x3xf32>
    %3 = vector.shape_cast %2 : vector<1x16x3xf32> to vector<16x3xf32>
    %c3 = arith.constant 3 : index
    %c0_4 = arith.constant 0 : index
    %4 = vector.load %arg5[%c3, %c0_4] : memref<22x3xf32, #tpu.memory_space<vmem>>, vector<16x3xf32>
    tpu.vector_store %arg5[%c3, %c0_4], %3 {strides = array<i32>} : memref<22x3xf32, #tpu.memory_space<vmem>>, vector<16x3xf32>,
    %c0_5 = arith.constant 0 : index
    %c0_6 = arith.constant 0 : index
    %5 = vector.load %arg5[%c0_5, %c0_6] : memref<22x3xf32, #tpu.memory_space<vmem>>, vector<16x3xf32>
    %c1 = arith.constant 1 : index
    %c0_7 = arith.constant 0 : index
    %6 = vector.load %arg5[%c1, %c0_7] : memref<22x3xf32, #tpu.memory_space<vmem>>, vector<16x3xf32>
    %c2 = arith.constant 2 : index
    %c0_8 = arith.constant 0 : index
    %7 = vector.load %arg5[%c2, %c0_8] : memref<22x3xf32, #tpu.memory_space<vmem>>, vector<16x3xf32>
    %c3_9 = arith.constant 3 : index
    %c0_10 = arith.constant 0 : index
    %8 = vector.load %arg5[%c3_9, %c0_10] : memref<22x3xf32, #tpu.memory_space<vmem>>, vector<16x3xf32>
    %c4 = arith.constant 4 : index
    %c0_11 = arith.constant 0 : index
    %9 = vector.load %arg5[%c4, %c0_11] : memref<22x3xf32, #tpu.memory_space<vmem>>, vector<16x3xf32>
    %c5 = arith.constant 5 : index
    %c0_12 = arith.constant 0 : index
    %10 = vector.load %arg5[%c5, %c0_12] : memref<22x3xf32, #tpu.memory_space<vmem>>, vector<16x3xf32>
    %c6 = arith.constant 6 : index
    %c0_13 = arith.constant 0 : index
    %11 = vector.load %arg5[%c6, %c0_13] : memref<22x3xf32, #tpu.memory_space<vmem>>, vector<16x3xf32>
    %12 = tpu.concatenate %5, %6, %7, %8, %9, %10, %11 in 1 : vector<16x3xf32>, vector<16x3xf32>, vector<16x3xf32>, vector<16x3xf32>, vector<16x3xf32>, vector<16x3xf32>, vector<16x3xf32> -> vector<16x21xf32>
    %c0_14 = arith.constant 0 : index
    %c0_15 = arith.constant 0 : index
    %13 = vector.load %arg2[%c0_14, %c0_15] : memref<21x8xf32, #tpu.memory_space<vmem>>, vector<21x8xf32>
    %cst_16 = arith.constant dense<0.000000e+00> : vector<16x8xf32>
    %14 = tpu.matmul %12, %13, %cst_16 {dimension_numbers = #tpu.dot_dimension_numbers<[1], [0], [0], [1], [0, 0, 1, 1], [], []>, precision = #tpu.contract_precision<fp32>} : vector<16x21xf32>, vector<21x8xf32>, vector<16x8xf32> -> vector<16x8xf32>
    %c0_17 = arith.constant 0 : index
    %c0_18 = arith.constant 0 : index
    %15 = vector.load %arg3[%c0_17, %c0_18] : memref<1x8xf32, #tpu.memory_space<vmem>>, vector<1x8xf32>
    %16 = vector.broadcast %15 : vector<1x8xf32> to vector<16x8xf32>
    %17 = arith.addf %14, %16 : vector<16x8xf32>
    %cst_19 = arith.constant 0.000000e+00 : f32
    %18 = vector.broadcast %cst_19 : f32 to vector<16x8xf32>
    %19 = arith.maximumf %17, %18 : vector<16x8xf32>
    %c0_20 = arith.constant 0 : index
    %c0_21 = arith.constant 0 : index
    %c0_22 = arith.constant 0 : index
    %20 = vector.load %arg4[%c0_20, %c0_21, %c0_22] : memref<1x16x8xf32, #tpu.memory_space<vmem>>, vector<1x16x8xf32>
    %21 = vector.shape_cast %20 : vector<1x16x8xf32> to vector<16x8xf32>
    %22 = vector.shape_cast %19 : vector<16x8xf32> to vector<1x16x8xf32>
    tpu.vector_store %arg4[%c0_20, %c0_21, %c0_22], %22 {strides = array<i32>} : memref<1x16x8xf32, #tpu.memory_space<vmem>>, vector<1x16x8xf32>,
    return
  }
  func.func @transform_0(%arg0: i32) -> (i32, i32, i32) {
    %c0_i32 = arith.constant 0 : i32
    %c0_i32_0 = arith.constant 0 : i32
    %c0_i32_1 = arith.constant 0 : i32
    return %arg0, %c0_i32, %c0_i32_0 : i32, i32, i32
  }
  func.func @transform_1(%arg0: i32) -> (i32, i32) {
    %c0_i32 = arith.constant 0 : i32
    %c0_i32_0 = arith.constant 0 : i32
    %c0_i32_1 = arith.constant 0 : i32
    return %c0_i32, %c0_i32_0 : i32, i32
  }
  func.func @transform_2(%arg0: i32) -> (i32, i32) {
    %c0_i32 = arith.constant 0 : i32
    %c0_i32_0 = arith.constant 0 : i32
    %c0_i32_1 = arith.constant 0 : i32
    return %c0_i32, %c0_i32_0 : i32, i32
  }
  func.func @transform_3(%arg0: i32) -> (i32, i32, i32) {
    %c0_i32 = arith.constant 0 : i32
    %c0_i32_0 = arith.constant 0 : i32
    %c0_i32_1 = arith.constant 0 : i32
    return %arg0, %c0_i32, %c0_i32_0 : i32, i32, i32
  }
}

</mosaic_0001>

<bundles_post_ra>
// kernel: tpu_custom_call.1
= control target key start
LH: loop header
LB: loop body
LE: loop exit
PB: predicated region body
PF: predicated region fallthrough
CT: control target
= control target key end

     0   :  { %s1003_s12 = smov 0   ;;  %s1105_s0 = inlined_call_operand.vmem [shape: f32[2,16,3], index: 0, kind: input, shape index: {}]   ;;  %s1106_s1 = inlined_call_operand.vmem [shape: f32[21,8], index: 1, kind: input, shape index: {}]   ;;  %s1107_s2 = inlined_call_operand.vmem [shape: f32[1,8], index: 2, kind: input, shape index: {}]   ;;  %s1108_s3 = inlined_call_operand.vmem [shape: f32[2,16,8], index: 3, kind: output, shape index: {}]  }
   0x1 LB: > { %s855_s13 = sadd.s32 4294967295, %s974_s12   ;;  %p859_p0 = scmp.ge.s32.totalorder %s974_s12, 1  ;;  %s974_s12 = sphi %s1003_s12, %s13_s12  }
   0x2   : > { %p137_p1 = scmp.lt.s32.totalorder %s974_s12, 3 }
   0x4   : > { %p138_p2 = pnand %p859_p0, %p137_p1 }
   0x5   : > { %p161_p3 = scmp.lt.s32.totalorder (!%p138_p2), %s855_s13, 1  ;;  %s977_s24 = smov (!%p138_p2), 6  }
   0x6   : > { %141 = sbr.rel (%p138_p2) target bundleno = 387 (0x183), region = 32  ;;  %s978_s25 = smov (!%p138_p2), 3  }
   0x7   : > { %s979_s26 = smov (!%p138_p2), 9   ;;  %s980_s27 = smov (!%p138_p2), 12  }
   0x8   : > { %s981_s28 = smov (!%p138_p2), 15   ;;  %s982_s29 = smov (!%p138_p2), 18  }
   0xb   : > { %vm171_vm0 = vcmask 23552   ;;  %vm174_vm1 = vcmask 21504   ;;  %v976_v0 = vmov 0.0   ;;  %s1110_s13 = smov (!%p161_p3, %s855_s13), 1  ;;  %v261_v3 = vld [vmem:[%s1106_s1 + $0x10] sm:$0x1f] }
   0xc   : > { %172 = vst.msk [vmem:[#allocation2] sm:$0xff] %vm171_vm0, %v976_v0  ;;  %173 = vst.msk [vmem:[#allocation2 + $0x8] sm:$0xff] %vm171_vm0, %v976_v0  ;;  %s867_s14 = sshll.u32 %s1110_s13, 4  ;;  %vm276_vm2 = vcmask 1044480   ;;  %v260_v6 = vld [vmem:[%s1106_s1 + $0x8] sm:$0xff]  ;;  %v259_v9 = vld [vmem:[%s1106_s1] sm:$0xff] }
   0xd   : > { %175 = vst.msk [vmem:[#allocation2 + $0x10] sm:$0x3f] %vm174_vm1, %v976_v0  ;;  %s165_s17 = scalar_lea.vmem %s1105_s0, %s867_s14  ;;  %v278_v4 = vsel %vm276_vm2, %v261_v3, 0  ;;  %v1034_v8 = vand.u32 4294901760, %v260_v6  ;;  %v1047_v14 = vand.u32 4294901760, %v259_v9  ;;  %vm244_vm3 = vcmask 48128   ;;  %s170_s7 = scalar_lea.vmem %s1108_s3, %s867_s14 }
   0xe   : > { %v176_v1 = vld [vmem:[%s165_s17] sm:$0xff]  ;;  %v177_v2 = vld [vmem:[%s165_s17 + $0x8] sm:$0xff]  ;;  %v1026_v5 = vand.u32 4294901760, %v278_v4  ;;  %vm247_vm4 = vcmask 72704   ;;  %vm250_vm5 = vcmask 97280   ;;  %vm253_vm6 = vcmask 121856  }
   0xf   : > { %178 = vst.msk [vmem:[#allocation2 + $0x3] sm:$0xff] %vm171_vm0, %v176_v1  ;;  %179 = vst.msk [vmem:[#allocation2 + $0xb] sm:$0xff] %vm171_vm0, %v177_v2  ;;  %v1045_v13 = vsub.f32 %v260_v6, %v1034_v8  ;;  %v1056_v19 = vsub.f32 %v259_v9, %v1047_v14  ;;  %vm256_vm7 = vcmask 146432   ;;  %vm269_vm8 = vcmask 171008  }
  0x10   : > { %v1032_v7 = vsub.f32 %v278_v4, %v1026_v5  ;;  %899 = vmatprep.subr.mxu0 %v1026_v5  ;;  %vm797_vm9 = vcmask 64512  }
  0x11   : > { %900 = vmatpush3.msra.mxu0 %v1026_v5  ;;  %v1053_v18 = vand.u32 4294901760, %v1045_v13  ;;  %v1064_v22 = vand.u32 4294901760, %v1056_v19 }
  0x12   : > { %v1042_v12 = vand.u32 4294901760, %v1032_v7  ;;  %901 = vmatprep.subr.mxu0 %v1034_v8 }
  0x13   : > { %902 = vmatpush3.msra.mxu0 %v1034_v8  ;;  %v405_v21 = vsub.f32 %v1045_v13, %v1053_v18  ;;  %v412_v26 = vsub.f32 %v1056_v19, %v1064_v22 }
  0x14   : > { %v398_v17 = vsub.f32 %v1032_v7, %v1042_v12  ;;  %903 = vmatprep.subr.mxu0 %v1047_v14 }
  0x15   : > { %904 = vmatpush3.msra.mxu0 %v1047_v14  ;;  %v406_v25 = vand.u32 4294901760, %v405_v21  ;;  %v413_v27 = vand.u32 4294901760, %v412_v26 }
  0x16   : > { %v184_v10 = vld [vmem:[#allocation2 + $0x2] sm:$0xff]  ;;  %v185_v15 = vld [vmem:[#allocation2 + $0xa] sm:$0xff]  ;;  %v399_v20 = vand.u32 4294901760, %v398_v17  ;;  %917 = vmatprep.subr.mxu0 %v1032_v7 }
  0x17   : > { %v182_v11 = vld [vmem:[#allocation2 + $0x1] sm:$0xff]  ;;  %204 = vrot.lane.b32.xlu1 %v184_v10, %s977_s24  ;;  %v183_v16 = vld [vmem:[#allocation2 + $0x9] sm:$0xff] }
  0x18   : > { %196 = vrot.lane.b32.xlu0 %v182_v11, %s978_s25  ;;  %v187_v23 = vld [vmem:[#allocation2 + $0xb] sm:$0xff]  ;;  %v186_v24 = vld [vmem:[#allocation2 + $0x3] sm:$0xff]  ;;  %908 = vmatprep.subr.mxu1 %v399_v20 }
  0x19   : > { %909 = vmatpush3.msra.mxu1 %v399_v20  ;;  %v189_v28 = vld [vmem:[#allocation2 + $0xc] sm:$0xff]  ;;  %v188_v29 = vld [vmem:[#allocation2 + $0x4] sm:$0xff] }
  0x1a   : > { %910 = vmatprep.subr.mxu1 %v406_v25  ;;  %v191_v30 = vld [vmem:[#allocation2 + $0xd] sm:$0xff]  ;;  %v190_v31 = vld [vmem:[#allocation2 + $0x5] sm:$0xff] }
  0x1b   : > { %206 = vrot.lane.b32.xlu1 %v185_v15, %s977_s24  ;;  %911 = vmatpush3.msra.mxu1 %v406_v25  ;;  %v193_v32 = vld [vmem:[#allocation2 + $0xe] sm:$0xff]  ;;  %v192_v33 = vld [vmem:[#allocation2 + $0x6] sm:$0xff] }
  0x1c   : > { %198 = vrot.lane.b32.xlu0 %v183_v16, %s978_s25  ;;  %912 = vmatprep.subr.mxu1 %v413_v27  ;;  %v180_v40 = vld [vmem:[#allocation2] sm:$0xff]  ;;  %v181_v41 = vld [vmem:[#allocation2 + $0x8] sm:$0xff] }
  0x1d   : > { %913 = vmatpush3.msra.mxu1 %v413_v27 }
  0x1e   : > { %926 = vmatprep.subr.mxu1 %v1026_v5 }
  0x1f   : > { %214 = vrot.lane.b32.xlu1 %v187_v23, %s979_s26 }
  0x20   : > { %212 = vrot.lane.b32.xlu0 %v186_v24, %s979_s26 }
  0x23   : > { %222 = vrot.lane.b32.xlu1 %v189_v28, %s980_s27 }
  0x24   : > { %220 = vrot.lane.b32.xlu0 %v188_v29, %s980_s27 }
  0x27   : > { %230 = vrot.lane.b32.xlu1 %v191_v30, %s981_s28 }
  0x28   : > { %228 = vrot.lane.b32.xlu0 %v190_v31, %s981_s28 }
  0x2b   : > { %238 = vrot.lane.b32.xlu1 %v193_v32, %s982_s29 }
  0x2c   : > { %236 = vrot.lane.b32.xlu0 %v192_v33, %s982_s29 }
  0x89   : > { %v205_v34 = vpop.permute.xlu1 %204 }
  0x8a   : > { %v197_v35 = vpop.permute.xlu0 %196 }
  0x8b   : > { %v242_v44 = vsel %vm171_vm0, %v180_v40, %v197_v35 }
  0x8c   : > { %v245_v49 = vsel %vm244_vm3, %v242_v44, %v205_v34 }
  0x8d   : > { %v207_v36 = vpop.permute.xlu1 %206 }
  0x8e   : > { %v199_v37 = vpop.permute.xlu0 %198 }
  0x8f   : > { %v243_v45 = vsel %vm171_vm0, %v181_v41, %v199_v37 }
  0x90   : > { %v246_v48 = vsel %vm244_vm3, %v243_v45, %v207_v36 }
  0x91   : > { %v215_v38 = vpop.permute.xlu1 %214 }
  0x92   : > { %v213_v39 = vpop.permute.xlu0 %212  ;;  %v249_v50 = vsel %vm247_vm4, %v246_v48, %v215_v38 }
  0x93   : > { %v248_v51 = vsel %vm247_vm4, %v245_v49, %v213_v39 }
  0x95   : > { %v223_v42 = vpop.permute.xlu1 %222 }
  0x96   : > { %v221_v43 = vpop.permute.xlu0 %220  ;;  %v252_v52 = vsel %vm250_vm5, %v249_v50, %v223_v42 }
  0x97   : > { %v251_v53 = vsel %vm250_vm5, %v248_v51, %v221_v43 }
  0x99   : > { %v231_v46 = vpop.permute.xlu1 %230 }
  0x9a   : > { %v229_v47 = vpop.permute.xlu0 %228  ;;  %v255_v54 = vsel %vm253_vm6, %v252_v52, %v231_v46 }
  0x9b   : > { %v254_v55 = vsel %vm253_vm6, %v251_v53, %v229_v47 }
  0x9d   : > { %v239_v56 = vpop.permute.xlu1 %238 }
  0x9e   : > { %v237_v57 = vpop.permute.xlu0 %236  ;;  %v258_v58 = vsel %vm256_vm7, %v255_v54, %v239_v56 }
  0x9f   : > { %v257_v59 = vsel %vm256_vm7, %v254_v55, %v237_v57  ;;  %v274_v60 = vsel %vm269_vm8, %v258_v58, 0 }
  0xa0   : > { %v271_v61 = vsel %vm269_vm8, %v257_v59, 0  ;;  %v358_v62 = vand.u32 4294901760, %v274_v60 }
  0xa1   : > { %v348_v63 = vand.u32 4294901760, %v271_v61 }
  0xa2   : > { %v359_v0 = vsub.f32 %v274_v60, %v358_v62 }
  0xa3   : > { %v349_v1 = vsub.f32 %v271_v61, %v348_v63  ;;  %914 = vmatprep.mubr.f32.mxu1 %v348_v63 }
  0xa4   : > { %915 = vmatmul.mubr.f32.vlgmr.msra.gmra.mxu1 %v358_v62  ;;  %v360_v3 = vand.u32 4294901760, %v359_v0 }
  0xa5   : > { %927 = vmatpush3.msra.mxu1 %v1026_v5  ;;  %v350_v2 = vand.u32 4294901760, %v349_v1 }
  0xa6   : > { %928 = vmatprep.subr.mxu1 %v1034_v8  ;;  %v361_v6 = vsub.f32 %v359_v0, %v360_v3 }
  0xa7   : > { %929 = vmatpush3.msra.mxu1 %v1034_v8  ;;  %932 = vmatprep.mubr.f32.mxu1 %v350_v2  ;;  %v351_v4 = vsub.f32 %v349_v1, %v350_v2 }
  0xa8   : > { %930 = vmatprep.subr.mxu1 %v1047_v14  ;;  %v362_v10 = vand.u32 4294901760, %v361_v6 }
  0xa9   : > { %931 = vmatpush3.msra.mxu1 %v1047_v14  ;;  %v352_v9 = vand.u32 4294901760, %v351_v4 }
  0xaa   : > { %933 = vmatmul.mubr.f32.vlgmr.msra.gmra.mxu1 %v360_v3  ;;  %944 = vmatprep.subr.mxu1 %v1026_v5 }
  0xab   : > { %945 = vmatpush3.msra.mxu1 %v1026_v5  ;;  %950 = vmatprep.mubr.f32.mxu1 %v348_v63 }
  0xac   : > { %905 = vmatprep.mubr.f32.mxu0 %v352_v9  ;;  %946 = vmatprep.subr.mxu1 %v1034_v8 }
  0xad   : > { %906 = vmatmul.mubr.f32.vlgmr.msra.gmra.mxu0 %v362_v10  ;;  %947 = vmatpush3.msra.mxu1 %v1034_v8 }
  0xae   : > { %918 = vmatpush3.msra.mxu0 %v1032_v7  ;;  %923 = vmatprep.mubr.f32.mxu0 %v349_v1  ;;  %v864_v7 = vld [vmem:[%s1107_s2] ss:$0 sm:$0xff] }
  0xaf   : > { %919 = vmatprep.subr.mxu0 %v1045_v13  ;;  %948 = vmatprep.subr.mxu1 %v1047_v14 }
  0xb0   : > { %920 = vmatpush3.msra.mxu0 %v1045_v13  ;;  %949 = vmatpush3.msra.mxu1 %v1047_v14 }
  0xb1   : > { %921 = vmatprep.subr.mxu0 %v1056_v19  ;;  %951 = vmatmul.mubr.f32.vlgmr.msra.gmra.mxu1 %v358_v62 }
  0xb2   : > { %922 = vmatpush3.msra.mxu0 %v1056_v19 }
  0xb3   : > { %924 = vmatmul.mubr.f32.vlgmr.msra.gmra.mxu0 %v359_v0  ;;  %935 = vmatprep.subr.mxu0 %v1042_v12 }
  0xb4   : > { %936 = vmatpush3.msra.mxu0 %v1042_v12  ;;  %941 = vmatprep.mubr.f32.mxu0 %v348_v63 }
  0xb5   : > { %937 = vmatprep.subr.mxu0 %v1053_v18 }
  0xb6   : > { %938 = vmatpush3.msra.mxu0 %v1053_v18 }
  0xb7   : > { %939 = vmatprep.subr.mxu0 %v1064_v22 }
  0xb8   : > { %940 = vmatpush3.msra.mxu0 %v1064_v22 }
  0xb9   : > { %942 = vmatmul.mubr.f32.vlgmr.msra.gmra.mxu0 %v358_v62 }
 0x164   : > { %v916_v5 = vpop.f32.mrf.mxu1 }
 0x166   : > { %v450_v13 = vpop.f32.mrf.mxu1 }
 0x16a   : > { %v934_v17 = vpop.f32.mrf.mxu1 }
 0x16c   : > { %v617_v22 = vpop.f32.mrf.mxu1 }
 0x16d   : > { %v907_v8 = vpop.f32.mrf.mxu0 }
 0x16e   : > { %v365_v11 = vadd.f32 %v907_v8, %v864_v7 }
 0x16f   : > { %v354_v14 = vpop.f32.mrf.mxu0 }
 0x170   : > { %v355_v12 = vadd.f32 %v864_v7, %v354_v14  ;;  %v457_v15 = vadd.f32 %v916_v5, %v365_v11 }
 0x171   : > { %v952_v24 = vpop.f32.mrf.mxu1 }
 0x172   : > { %v451_v16 = vadd.f32 %v450_v13, %v355_v12 }
 0x173   : > { %v925_v18 = vpop.f32.mrf.mxu0  ;;  %v785_v31 = vpop.f32.mrf.mxu1 }
 0x174   : > { %v542_v19 = vadd.f32 %v925_v18, %v457_v15 }
 0x175   : > { %v534_v20 = vpop.f32.mrf.mxu0 }
 0x176   : > { %v535_v21 = vadd.f32 %v534_v20, %v451_v16  ;;  %v626_v23 = vadd.f32 %v934_v17, %v542_v19 }
 0x178   : > { %v618_v27 = vadd.f32 %v617_v22, %v535_v21 }
 0x179   : > { %v943_v25 = vpop.f32.mrf.mxu0 }
 0x17a   : > { %v712_v26 = vadd.f32 %v943_v25, %v626_v23 }
 0x17b   : > { %v705_v28 = vpop.f32.mrf.mxu0 }
 0x17c   : > { %v792_v29 = vadd.f32 %v952_v24, %v712_v26  ;;  %v706_v30 = vadd.f32 %v705_v28, %v618_v27 }
 0x17e   : > { %v796_v32 = vmax.f32 %v792_v29, 0.0  ;;  %v786_v33 = vadd.f32 %v785_v31, %v706_v30 }
 0x180   : > { %799 = vst.msk [vmem:[%s170_s7 + $0x8] sm:$0xff] %vm797_vm9, %v796_v32  ;;  %v795_v34 = vmax.f32 %v786_v33, 0.0 }
 0x182   : > { %798 = vst.msk [vmem:[%s170_s7] sm:$0xff] %vm797_vm9, %v795_v34 }
 0x183 PF: > { %s13_s12 = sadd.s32 1, %s974_s12  }
 0x184   : > { %p10_p4 = scmp.ge.s32.totalorder %s13_s12, 4  }
 0x186   :  { %12 = sbr.rel (!%p10_p4) target bundleno = 1 (0x1), region = 62 }

</bundles_post_ra>
